<compile_context>
chip_gen: v7x
topology: tpu7x:2x2x1
jax: 0.10.0
libtpu: 0.0.40
codegen_flags: <defaults>
</compile_context>

<pallas_src>
import jax
import jax.numpy as jnp
from jax.experimental import pallas as pl
from jax.experimental.pallas import tpu as pltpu

_LANE = 128
_SUBLANE = 8


def _round_up(x, m):
    return ((x + m - 1) // m) * m


def _mlp_kernel(x_ref, w1_ref, b1_ref, w2_ref, b2_ref, w3_ref, b3_ref, o_ref):
    # x arrives f32 straight from HBM (no wrapper pad/cast pass); cast on the VPU.
    x = x_ref[...].astype(jnp.bfloat16)
    # Layer 1: bf16 operands on the MXU, f32 accumulation; bias + ReLU in f32.
    h1 = jnp.dot(x, w1_ref[...], preferred_element_type=jnp.float32)
    h1 = jnp.maximum(h1 + b1_ref[...], 0.0)
    # Layer 2: sigmoid lowers to the EUP (separate VLIW slot, effectively free).
    h2 = jnp.dot(h1.astype(jnp.bfloat16), w2_ref[...],
                 preferred_element_type=jnp.float32)
    h2 = jax.nn.sigmoid(h2 + b2_ref[...])
    # Output layer (no activation). Output block last dim == n_out (unpadded),
    # stored f32 to preserve the module's output precision.
    y = jnp.dot(h2.astype(jnp.bfloat16), w3_ref[...],
                preferred_element_type=jnp.float32)
    o_ref[...] = (y + b3_ref[...]).astype(o_ref.dtype)


def prepare_params(w1, b1, w2, b2, w3, b3):
    """One-time weight prep (keep it OUT of the per-call hot path).

    Pads only the hidden dimension to a multiple of 128 lanes and casts weights
    to bf16 (halves weight HBM/VMEM traffic). Biases stay f32 as (1, dim) rows.

    NOTE (correctness): padded lanes of h2 equal sigmoid(0) = 0.5, not 0.  The
    result is exact only because the matching rows of w3 are zero-padded here.
    Do not read h2 / add residuals / re-pad w3 without revisiting this.
    """
    n_in, n_hidden = w1.shape
    n_out = w3.shape[1]
    hp = _round_up(n_hidden, _LANE)

    pad2 = lambda a, r, c: jnp.pad(a, ((0, r - a.shape[0]), (0, c - a.shape[1])))

    w1p = pad2(w1, n_in, hp).astype(jnp.bfloat16)            # (n_in, hp)
    w2p = pad2(w2, hp, hp).astype(jnp.bfloat16)              # (hp, hp)
    w3p = pad2(w3, hp, n_out).astype(jnp.bfloat16)           # (hp, n_out) zero rows!
    b1p = pad2(b1.astype(jnp.float32).reshape(1, -1), 1, hp)
    b2p = pad2(b2.astype(jnp.float32).reshape(1, -1), 1, hp)
    b3p = b3.astype(jnp.float32).reshape(1, -1)              # (1, n_out) unpadded
    return (w1p, b1p, w2p, b2p, w3p, b3p)


def _choose_batch_tile(batch, block_batch):
    # Tile must be a multiple of 8 (sublane). Prefer large tiles (amortize the
    # ~0.35us per-step overhead), but guarantee >= 2 grid steps when batch
    # allows it so v7x's two TensorCores both get work (no-op on v5e/v6e).
    tb = min(block_batch, _round_up(batch, _SUBLANE))
    if batch >= 2 * _SUBLANE and pl.cdiv(batch, tb) < 2:
        tb = _round_up(pl.cdiv(batch, 2), _SUBLANE)
    return tb


def mlp_forward(x, params, *, block_batch=1024):
    """Net.forward fused in one Pallas kernel, pipelined over batch tiles."""
    w1p, b1p, w2p, b2p, w3p, b3p = params
    batch, n_in = x.shape
    assert w1p.shape[0] == n_in, "params were prepared for a different n_input"
    n_out = w3p.shape[1]

    tb = _choose_batch_tile(batch, block_batch)
    bp = _round_up(batch, tb)
    # Batch-only zero pad when the tile doesn't divide (no feature-dim padding,
    # no dtype cast pass over x).
    xp = x if bp == batch else jnp.pad(x, ((0, bp - batch), (0, 0)))

    # Weights/biases: full-array block + constant index_map -> fetched once and
    # VMEM-resident across the whole grid.
    # TODO(synk): for large n_hidden on v7x (64 MiB VMEM), single-buffer these
    # residents (pipeline_mode=pl.Buffered(1)) and re-derive vmem_limit_bytes.
    resident = lambda a: pl.BlockSpec(a.shape, lambda i: (0, 0))

    out = pl.pallas_call(
        _mlp_kernel,
        out_shape=jax.ShapeDtypeStruct((bp, n_out), jnp.float32),
        grid=(bp // tb,),
        in_specs=[
            # x: tiled over batch, auto-pipelined; last block dim == full n_in.
            pl.BlockSpec((tb, n_in), lambda i: (i, 0)),
            resident(w1p), resident(b1p),
            resident(w2p), resident(b2p),
            resident(w3p), resident(b3p),
        ],
        # Output block last dim == n_out (unpadded): masked vst, but 32x fewer
        # bytes than padding tiny n_out to 128.
        out_specs=pl.BlockSpec((tb, n_out), lambda i: (i, 0)),
        compiler_params=pltpu.CompilerParams(
            # Batch tiles are independent -> megacore sharding on v7x.
            dimension_semantics=("parallel",),
            # ~2 MiB actually used at these sizes; 32 MiB is above v5e's 16 MiB
            # scoped default and leaves headroom on v7x's 64 MiB physical.
            # Raise (v6e: up to 64-96 MiB) only if tb / n_hidden grow a lot.
            vmem_limit_bytes=32 * 1024 * 1024,
        ),
    )(xp, w1p, b1p, w2p, b2p, w3p, b3p)

    return out if bp == batch else out[:batch]


def init_params(key, n_input, n_hidden, n_output):
    """Deterministic init mirroring nn.Linear shapes (W stored as [in, out])."""
    ks = jax.random.split(key, 6)

    def linear(kw, kb, fan_in, fan_out):
        bound = 1.0 / jnp.sqrt(fan_in)
        w = jax.random.uniform(kw, (fan_in, fan_out), jnp.float32, -bound, bound)
        b = jax.random.uniform(kb, (fan_out,), jnp.float32, -bound, bound)
        return w, b

    w1, b1 = linear(ks[0], ks[1], n_input, n_hidden)
    w2, b2 = linear(ks[2], ks[3], n_hidden, n_hidden)
    w3, b3 = linear(ks[4], ks[5], n_hidden, n_output)
    return w1, b1, w2, b2, w3, b3


if __name__ == "__main__":
    key = jax.random.PRNGKey(0)
    n_input, n_hidden, n_output = 16, 32, 4
    batch = 8

    k_x, k_p = jax.random.split(key)
    x = jax.random.normal(k_x, (batch, n_input), jnp.float32)
    raw = init_params(k_p, n_input, n_hidden, n_output)

    # One-time weight prep (padding + bf16 cast) outside the hot path.
    params = prepare_params(*raw)

    out = mlp_forward(x, params)
    jax.block_until_ready(out)

    # Reference emulating the kernel's numerics: bf16 matmul operands, f32
    # accumulation, f32 bias/activation math.
    w1, b1, w2, b2, w3, b3 = raw
    bf = lambda a: a.astype(jnp.bfloat16).astype(jnp.float32)
    h1 = jnp.maximum(bf(x) @ bf(w1) + b1, 0.0)
    h2 = jax.nn.sigmoid(bf(h1) @ bf(w2) + b2)
    ref = bf(h2) @ bf(w3) + b3

    assert out.shape == (batch, n_output)
    assert jnp.allclose(out, ref, atol=2e-3, rtol=2e-3), (
        f"max abs err {jnp.max(jnp.abs(out - ref))}")

    # Looser sanity check against the pure-f32 forward pass (PyTorch semantics).
    h1f = jnp.maximum(x @ w1 + b1, 0.0)
    h2f = jax.nn.sigmoid(h1f @ w2 + b2)
    reff = h2f @ w3 + b3
    assert jnp.allclose(out, reff, atol=5e-2, rtol=5e-2)

    print("KERNEL_OK")
</pallas_src>

<mosaic_0001>
module attributes {stable_mosaic.version = 11 : i64} {
  func.func @_mlp_kernel(%arg0: i32, %arg1: memref<8x16xf32, #tpu.memory_space<vmem>>, %arg2: memref<16x128xbf16, #tpu.memory_space<vmem>>, %arg3: memref<1x128xf32, #tpu.memory_space<vmem>>, %arg4: memref<128x128xbf16, #tpu.memory_space<vmem>>, %arg5: memref<1x128xf32, #tpu.memory_space<vmem>>, %arg6: memref<128x4xbf16, #tpu.memory_space<vmem>>, %arg7: memref<1x4xf32, #tpu.memory_space<vmem>>, %arg8: memref<8x4xf32, #tpu.memory_space<vmem>>) attributes {dimension_semantics = [#tpu.dimension_semantics<parallel>], iteration_bounds = array<i64: 1>, scalar_prefetch = 0 : i64, scratch_operands = 0 : i64, tpu.core_type = #tpu.core_type<tc>, window_params = [{transform_indices = @transform_0, window_bounds = array<i64: 8, 16>}, {pipeline_mode = #tpu.pipeline_mode<synchronous>, transform_indices = @transform_1, window_bounds = array<i64: 16, 128>}, {pipeline_mode = #tpu.pipeline_mode<synchronous>, transform_indices = @transform_2, window_bounds = array<i64: 1, 128>}, {pipeline_mode = #tpu.pipeline_mode<synchronous>, transform_indices = @transform_3, window_bounds = array<i64: 128, 128>}, {pipeline_mode = #tpu.pipeline_mode<synchronous>, transform_indices = @transform_4, window_bounds = array<i64: 1, 128>}, {pipeline_mode = #tpu.pipeline_mode<synchronous>, transform_indices = @transform_5, window_bounds = array<i64: 128, 4>}, {pipeline_mode = #tpu.pipeline_mode<synchronous>, transform_indices = @transform_6, window_bounds = array<i64: 1, 4>}, {transform_indices = @transform_7, window_bounds = array<i64: 8, 4>}]} {
    %c0 = arith.constant 0 : index
    %c0_0 = arith.constant 0 : index
    %0 = vector.load %arg1[%c0, %c0_0] : memref<8x16xf32, #tpu.memory_space<vmem>>, vector<8x16xf32>
    %1 = arith.truncf %0 : vector<8x16xf32> to vector<8x16xbf16>
    %c0_1 = arith.constant 0 : index
    %c0_2 = arith.constant 0 : index
    %2 = vector.load %arg2[%c0_1, %c0_2] : memref<16x128xbf16, #tpu.memory_space<vmem>>, vector<16x128xbf16>
    %cst = arith.constant dense<0.000000e+00> : vector<8x128xf32>
    %3 = tpu.matmul %1, %2, %cst {dimension_numbers = #tpu.dot_dimension_numbers<[1], [0], [0], [1], [0, 0, 1, 1], [], []>} : vector<8x16xbf16>, vector<16x128xbf16>, vector<8x128xf32> -> vector<8x128xf32>
    %c0_3 = arith.constant 0 : index
    %c0_4 = arith.constant 0 : index
    %4 = vector.load %arg3[%c0_3, %c0_4] : memref<1x128xf32, #tpu.memory_space<vmem>>, vector<1x128xf32>
    %5 = vector.broadcast %4 : vector<1x128xf32> to vector<8x128xf32>
    %6 = arith.addf %3, %5 : vector<8x128xf32>
    %cst_5 = arith.constant 0.000000e+00 : f32
    %7 = vector.broadcast %cst_5 : f32 to vector<8x128xf32>
    %8 = arith.maximumf %6, %7 : vector<8x128xf32>
    %9 = arith.truncf %8 : vector<8x128xf32> to vector<8x128xbf16>
    %c0_6 = arith.constant 0 : index
    %c0_7 = arith.constant 0 : index
    %10 = vector.load %arg4[%c0_6, %c0_7] : memref<128x128xbf16, #tpu.memory_space<vmem>>, vector<128x128xbf16>
    %cst_8 = arith.constant dense<0.000000e+00> : vector<8x128xf32>
    %11 = tpu.matmul %9, %10, %cst_8 {dimension_numbers = #tpu.dot_dimension_numbers<[1], [0], [0], [1], [0, 0, 1, 1], [], []>} : vector<8x128xbf16>, vector<128x128xbf16>, vector<8x128xf32> -> vector<8x128xf32>
    %c0_9 = arith.constant 0 : index
    %c0_10 = arith.constant 0 : index
    %12 = vector.load %arg5[%c0_9, %c0_10] : memref<1x128xf32, #tpu.memory_space<vmem>>, vector<1x128xf32>
    %13 = vector.broadcast %12 : vector<1x128xf32> to vector<8x128xf32>
    %14 = arith.addf %11, %13 : vector<8x128xf32>
    %15 = arith.negf %14 : vector<8x128xf32>
    %16 = math.exp %15 : vector<8x128xf32>
    %cst_11 = arith.constant 1.000000e+00 : f32
    %17 = vector.broadcast %cst_11 : f32 to vector<8x128xf32>
    %18 = arith.addf %17, %16 : vector<8x128xf32>
    %19 = arith.divf %17, %18 : vector<8x128xf32>
    %20 = arith.truncf %19 : vector<8x128xf32> to vector<8x128xbf16>
    %c0_12 = arith.constant 0 : index
    %c0_13 = arith.constant 0 : index
    %21 = vector.load %arg6[%c0_12, %c0_13] : memref<128x4xbf16, #tpu.memory_space<vmem>>, vector<128x4xbf16>
    %cst_14 = arith.constant dense<0.000000e+00> : vector<8x4xf32>
    %22 = tpu.matmul %20, %21, %cst_14 {dimension_numbers = #tpu.dot_dimension_numbers<[1], [0], [0], [1], [0, 0, 1, 1], [], []>} : vector<8x128xbf16>, vector<128x4xbf16>, vector<8x4xf32> -> vector<8x4xf32>
    %c0_15 = arith.constant 0 : index
    %c0_16 = arith.constant 0 : index
    %23 = vector.load %arg7[%c0_15, %c0_16] : memref<1x4xf32, #tpu.memory_space<vmem>>, vector<1x4xf32>
    %24 = vector.broadcast %23 : vector<1x4xf32> to vector<8x4xf32>
    %25 = arith.addf %22, %24 : vector<8x4xf32>
    %c0_17 = arith.constant 0 : index
    %c0_18 = arith.constant 0 : index
    %26 = vector.load %arg8[%c0_17, %c0_18] : memref<8x4xf32, #tpu.memory_space<vmem>>, vector<8x4xf32>
    tpu.vector_store %arg8[%c0_17, %c0_18], %25 {strides = array<i32>} : memref<8x4xf32, #tpu.memory_space<vmem>>, vector<8x4xf32>,
    return
  }
  func.func @transform_0(%arg0: i32) -> (i32, i32) {
    %c0_i32 = arith.constant 0 : i32
    %c0_i32_0 = arith.constant 0 : i32
    return %arg0, %c0_i32 : i32, i32
  }
  func.func @transform_1(%arg0: i32) -> (i32, i32) {
    %c0_i32 = arith.constant 0 : i32
    %c0_i32_0 = arith.constant 0 : i32
    %c0_i32_1 = arith.constant 0 : i32
    return %c0_i32, %c0_i32_0 : i32, i32
  }
  func.func @transform_2(%arg0: i32) -> (i32, i32) {
    %c0_i32 = arith.constant 0 : i32
    %c0_i32_0 = arith.constant 0 : i32
    %c0_i32_1 = arith.constant 0 : i32
    return %c0_i32, %c0_i32_0 : i32, i32
  }
  func.func @transform_3(%arg0: i32) -> (i32, i32) {
    %c0_i32 = arith.constant 0 : i32
    %c0_i32_0 = arith.constant 0 : i32
    %c0_i32_1 = arith.constant 0 : i32
    return %c0_i32, %c0_i32_0 : i32, i32
  }
  func.func @transform_4(%arg0: i32) -> (i32, i32) {
    %c0_i32 = arith.constant 0 : i32
    %c0_i32_0 = arith.constant 0 : i32
    %c0_i32_1 = arith.constant 0 : i32
    return %c0_i32, %c0_i32_0 : i32, i32
  }
  func.func @transform_5(%arg0: i32) -> (i32, i32) {
    %c0_i32 = arith.constant 0 : i32
    %c0_i32_0 = arith.constant 0 : i32
    %c0_i32_1 = arith.constant 0 : i32
    return %c0_i32, %c0_i32_0 : i32, i32
  }
  func.func @transform_6(%arg0: i32) -> (i32, i32) {
    %c0_i32 = arith.constant 0 : i32
    %c0_i32_0 = arith.constant 0 : i32
    %c0_i32_1 = arith.constant 0 : i32
    return %c0_i32, %c0_i32_0 : i32, i32
  }
  func.func @transform_7(%arg0: i32) -> (i32, i32) {
    %c0_i32 = arith.constant 0 : i32
    %c0_i32_0 = arith.constant 0 : i32
    return %arg0, %c0_i32 : i32, i32
  }
}

</mosaic_0001>

<bundles_post_ra>
// kernel: tpu_custom_call.1
= control target key start
LH: loop header
LB: loop body
LE: loop exit
PB: predicated region body
PF: predicated region fallthrough
CT: control target
= control target key end

     0   :  { %12 = vsyncpa [#allocation3], 0  ;;  %s478_s24 = smov [#allocation2]   ;;  %s618_s0 = inlined_call_operand.vmem [shape: f32[8,16], index: 0, kind: input, shape index: {}]   ;;  %s619_s1 = inlined_call_operand.hbm [shape: bf16[16,128], index: 1, kind: input, shape index: {}]   ;;  %s620_s2 = inlined_call_operand.vmem [shape: f32[1,128], index: 2, kind: input, shape index: {}]   ;;  %s621_s3 = inlined_call_operand.vmem [shape: bf16[128,128], index: 3, kind: input, shape index: {}]   ;;  %s622_s4 = inlined_call_operand.vmem [shape: f32[1,128], index: 4, kind: input, shape index: {}]   ;;  %s623_s5 = inlined_call_operand.vmem [shape: bf16[128,4], index: 5, kind: input, shape index: {}]   ;;  %s624_s6 = inlined_call_operand.vmem [shape: f32[1,4], index: 6, kind: input, shape index: {}]   ;;  %s625_s7 = inlined_call_operand.vmem [shape: f32[8,4], index: 7, kind: output, shape index: {}]  }
   0x1   :  { %s20_s25 = sshll.u32 %s478_s24, 4  ;;  %s454_s28 = scalar_lea.hbm %s619_s1, 128  ;;  %s21_s25 = int_to_ptr.vmem [resolvable:$true] %s20_s25 }
   0x2   :  { %p455_p0 = scmp.ne.s32.totalorder %s619_s1, %s454_s28  ;;  %p458_p1 = scmp.lt.u32.totalorder %s454_s28, %s619_s1 }
   0x4   :  { %p460_p2 = pnand %p458_p1, %p455_p0 }
   0x6   :  { %463 = shalt.err (!%p460_p2)
}
   0x7   :  { %s464_s10 = scalar_lea.vmem %s21_s25, 128  ;;  %p469_p4 = scmp.lt.s32.totalorder %s21_s25, %s21_s25 }
   0x8   :  { %p465_p3 = scmp.ne.s32.totalorder %s21_s25, %s464_s10  ;;  %p470_p5 = scmp.lt.s32.totalorder %s464_s10, %s464_s10 }
   0xa   :  { %p471_p6 = por %p470_p5, %p469_p4 }
   0xc   :  { %p472_p7 = pnand %p471_p6, %p465_p3 }
   0xe   :  { %475 = shalt.err (!%p472_p7)
}
   0xf   :  { %s479_s11 = smov 64   ;;  %s480_s12 = smov 4  }
  0x10   :  { %26 = dma.hbm_to_vmem [thread:$0]  %s619_s1, 128, %s21_s25, [#allocation3], %s479_s11, %s479_s11, %s480_s12  }
  0x11   :  { %476 = dma.done.wait [#allocation3], 128  }
  0x12   :  { %477 = vsyncadd [#allocation3], 4294967168  ;;  %v481_v0 = vmov 0.0   ;;  %vm482_vm0 = vmmov 0   ;;  %v433_v1 = vld [vmem:[#allocation2] sm:$0xff]   ;;  %vm58_vm1 = vcmask 130048  }
  0x13   :  { %382 = vmatprep.subr.bf16.mxu0 %v481_v0  ;;  %384 = vmatprep.mubr.msk.bf16.mxu0 %vm482_vm0, %v481_v0  ;;  %v41_v2 = vld [vmem:[%s618_s0] sm:$0xff]  ;;  %v435_v5 = vld [vmem:[%s621_s3 + $0x8] sm:$0xff]   ;;  %v436_v6 = vld [vmem:[%s621_s3 + $0x10] sm:$0xff]   ;;  %vm333_vm2 = vcmask 31744  }
  0x14   :  { %388 = vmatprep.subr.bf16.mxu1 %v481_v0  ;;  %404 = vmatprep.mubr.msk.bf16.mxu1 %vm482_vm0, %v481_v0  ;;  %v42_v3 = vpack.c.bf16 %v41_v2, %v41_v2  ;;  %v434_v4 = vld [vmem:[%s621_s3] sm:$0xff]   ;;  %v437_v7 = vld [vmem:[%s621_s3 + $0x18] sm:$0xff]   ;;  %v439_v9 = vld [vmem:[%s621_s3 + $0x28] sm:$0xff]  }
  0x15   :  { %383 = vmatpush3.bf16.msra.mxu0 %v433_v1  ;;  %389 = vmatpush3.bf16.msra.mxu1 %v434_v4  ;;  %v438_v8 = vld [vmem:[%s621_s3 + $0x20] sm:$0xff]   ;;  %v440_v10 = vld [vmem:[%s621_s3 + $0x30] sm:$0xff]   ;;  %v441_v11 = vld [vmem:[%s621_s3 + $0x38] sm:$0xff]  }
  0x16   :  { %408 = vmatprep.subr.bf16.mxu0 %v481_v0  ;;  %390 = vmatprep.subr.bf16.mxu1 %v481_v0  ;;  %v340_v12 = vld [vmem:[%s620_s2] ss:$0 sm:$0xff]  ;;  %v443_v21 = vld [vmem:[%s623_s5 + $0x8] sm:$0xff]   ;;  %v444_v22 = vld [vmem:[%s623_s5 + $0x10] sm:$0xff]  }
  0x17   :  { %v442_v20 = vld [vmem:[%s623_s5] sm:$0xff]   ;;  %v445_v23 = vld [vmem:[%s623_s5 + $0x18] sm:$0xff]   ;;  %v447_v25 = vld [vmem:[%s623_s5 + $0x28] sm:$0xff]  }
  0x18   :  { %385 = vmatmul.mubr.msk.bf16.vlgmr.msra.gmra.mrb[0].mxu0 %vm58_vm1, %v42_v3  ;;  %v446_v24 = vld [vmem:[%s623_s5 + $0x20] sm:$0xff]   ;;  %v448_v26 = vld [vmem:[%s623_s5 + $0x30] sm:$0xff]   ;;  %v449_v27 = vld [vmem:[%s623_s5 + $0x38] sm:$0xff]  }
  0x19   :  { %424 = vmatprep.mubr.msk.bf16.mxu0 %vm482_vm0, %v481_v0  ;;  %391 = vmatpush3.bf16.msra.mxu1 %v435_v5  ;;  %v343_v28 = vld [vmem:[%s622_s4] ss:$0 sm:$0xff] }
  0x1a   :  { %392 = vmatprep.subr.bf16.mxu1 %v481_v0  ;;  %409 = vmatpush3.bf16.msra.mxu0 %v442_v20  ;;  %v353_v39 = vld [vmem:[%s624_s6] ss:$0 sm:$0xff] }
  0x1b   :  { %410 = vmatprep.subr.bf16.mxu0 %v481_v0 }
  0x1d   :  { %393 = vmatpush3.bf16.msra.mxu1 %v436_v6 }
  0x1e   :  { %394 = vmatprep.subr.bf16.mxu1 %v481_v0  ;;  %411 = vmatpush3.bf16.msra.mxu0 %v443_v21 }
  0x1f   :  { %412 = vmatprep.subr.bf16.mxu0 %v481_v0 }
  0x21   :  { %395 = vmatpush3.bf16.msra.mxu1 %v437_v7 }
  0x22   :  { %396 = vmatprep.subr.bf16.mxu1 %v481_v0  ;;  %413 = vmatpush3.bf16.msra.mxu0 %v444_v22 }
  0x23   :  { %414 = vmatprep.subr.bf16.mxu0 %v481_v0 }
  0x25   :  { %397 = vmatpush3.bf16.msra.mxu1 %v438_v8 }
  0x26   :  { %398 = vmatprep.subr.bf16.mxu1 %v481_v0  ;;  %415 = vmatpush3.bf16.msra.mxu0 %v445_v23 }
  0x27   :  { %416 = vmatprep.subr.bf16.mxu0 %v481_v0 }
  0x29   :  { %399 = vmatpush3.bf16.msra.mxu1 %v439_v9 }
  0x2a   :  { %400 = vmatprep.subr.bf16.mxu1 %v481_v0  ;;  %417 = vmatpush3.bf16.msra.mxu0 %v446_v24 }
  0x2b   :  { %418 = vmatprep.subr.bf16.mxu0 %v481_v0 }
  0x2d   :  { %401 = vmatpush3.bf16.msra.mxu1 %v440_v10 }
  0x2e   :  { %402 = vmatprep.subr.bf16.mxu1 %v481_v0  ;;  %419 = vmatpush3.bf16.msra.mxu0 %v447_v25 }
  0x2f   :  { %420 = vmatprep.subr.bf16.mxu0 %v481_v0 }
  0x31   :  { %403 = vmatpush3.bf16.msra.mxu1 %v441_v11 }
  0x32   :  { %421 = vmatpush3.bf16.msra.mxu0 %v448_v26 }
  0x33   :  { %422 = vmatprep.subr.bf16.mxu0 %v481_v0 }
  0x36   :  { %423 = vmatpush3.bf16.msra.mxu0 %v449_v27 }
  0xeb   :  { %v96_v13 = vpop.f32.mrb[0].mxu0 }
  0xec   :  { %v97_v14 = vadd.f32 %v340_v12, %v96_v13  ;;  %v386_v15 = vpop.f32.mrb[1].mxu0 }
  0xed   :  { %v99_v16 = vpop.f32.mrb[2].mxu0 }
  0xee   :  { %v102_v17 = vmax.f32 %v97_v14, 0.0  ;;  %v387_v18 = vpop.f32.mrb[3].mxu0 }
  0xf0   :  { %v103_v19 = vpack.c.bf16 %v102_v17, %v102_v17 }
  0xf2   :  { %405 = vmatmul.mubr.bf16.vlgmr.msra.gmra.mrb[0].mxu1 %v103_v19 }
 0x1c5   :  { %v209_v29 = vpop.f32.mrb[0].mxu1 }
 0x1c6   :  { %v210_v30 = vadd.f32 %v343_v28, %v209_v29  ;;  %v406_v31 = vpop.f32.mrb[1].mxu1 }
 0x1c7   :  { %v212_v32 = vpop.f32.mrb[2].mxu1 }
 0x1c8   :  { %v352_v33 = vmul.f32 -1.442695, %v210_v30  ;;  %v407_v34 = vpop.f32.mrb[3].mxu1 }
 0x1ca   :  { %450 = vpow2.f32 %v352_v33 }
 0x1d4   :  { %v451_v35 = vpop.eup %450 }
 0x1d5   :  { %v218_v36 = vadd.f32 1.0, %v451_v35 }
 0x1d7   :  { %452 = vrcp.f32 %v218_v36 }
 0x1e1   :  { %v453_v37 = vpop.eup %452 }
 0x1e2   :  { %v221_v38 = vpack.c.bf16 %v453_v37, %v453_v37 }
 0x1e4   :  { %425 = vmatmul.mubr.bf16.vlgmr.msra.gmra.mrb[4].mxu0 %v221_v38 }
 0x2b7   :  { %v327_v40 = vpop.f32.mrb[4].mxu0 }
 0x2b8   :  { %v328_v41 = vadd.f32 %v353_v39, %v327_v40  ;;  %v426_v42 = vpop.f32.mrb[5].mxu0 }
 0x2b9   :  { %v330_v43 = vpop.f32.mrb[6].mxu0 }
 0x2ba   :  { %334 = vst.msk [vmem:[%s625_s7] sm:$0xff] %vm333_vm2, %v328_v41  ;;  %v427_v44 = vpop.f32.mrb[7].mxu0 }
 0x2bb   :  { %339 = vsyncpa [#allocation3], 1 }

</bundles_post_ra>
